<compile_context>
chip_gen: v5e
topology: v5e:2x2
jax: 0.10.0
libtpu: 0.0.40
codegen_flags: <defaults>
</compile_context>

<pallas_src>
import jax
import jax.numpy as jnp
from jax.experimental import pallas as pl
from jax.experimental.pallas import tpu as pltpu


def _scale_shift_kernel(mean_ref, std_ref, x_ref, o_ref):
    # mean / stddev are float32 scalars in SMEM (dataset statistics).
    mu = mean_ref[0, 0]
    sigma = std_ref[0, 0]
    y = x_ref[...].astype(jnp.float32) * sigma + mu
    o_ref[...] = y.astype(o_ref.dtype)


def _pick_lane(total):
    """Largest of 512/256/128 that divides total, else None (fallback)."""
    for lane in (512, 256, 128):
        if total % lane == 0:
            return lane
    return None


def _round_up(v, m):
    return ((v + m - 1) // m) * m


def _pick_tile_rows(rows, lane, itemsize, sub):
    """Adaptive row-tile size: ~8 grid steps, blocks in [~512 KiB, 8 MiB]."""
    bytes_per_row = lane * itemsize
    max_rows_by_bytes = max(sub, ((8 << 20) // bytes_per_row) // sub * sub)
    min_rows_by_bytes = max(sub, ((512 << 10) // bytes_per_row) // sub * sub)

    tile = _round_up(max(1, rows // 8), sub)          # aim for ~8 grid steps
    tile = max(tile, min_rows_by_bytes)               # keep blocks >= ~512 KiB
    tile = min(tile, max_rows_by_bytes)               # keep blocks <= 8 MiB
    tile = min(tile, _round_up(-(-rows // 2), sub))   # >= 2 steps (v7x 2 TCs)
    return max(tile, sub)


def scale_shift(x, mean, stddev, *, min_pallas_bytes=256 << 10):
    """y = x * stddev + mean (scalar mean/stddev) via a Pallas TPU kernel."""
    dtype = x.dtype
    total = x.size
    itemsize = jnp.dtype(dtype).itemsize

    # Non-floating dtypes: plain broadcast math (documented limitation of the
    # f32 compute path; matches PyTorch type promotion).
    if not jnp.issubdtype(dtype, jnp.floating):
        return x * jnp.asarray(stddev) + jnp.asarray(mean)

    mu = jnp.asarray(mean, dtype=jnp.float32)
    sigma = jnp.asarray(stddev, dtype=jnp.float32)

    lane = _pick_lane(total) if total > 0 else None

    # Fast / fallback path: empty, tiny, or lane-unalignable inputs. XLA is
    # already HBM-roofline for this op and padding would only add traffic.
    if total == 0 or total * itemsize < min_pallas_bytes or lane is None:
        return (x.astype(jnp.float32) * sigma + mu).astype(dtype)

    orig_shape = x.shape
    mean_arr = mu.reshape(1, 1)
    std_arr = sigma.reshape(1, 1)

    rows = total // lane               # exact: lane divides total
    x2d = x.reshape(rows, lane)        # free metadata reshape (no copy)

    # Sublane packing multiple: 8 for 32-bit, 16 for 16-bit, 32 for 8-bit.
    sub = max(8, 32 // max(1, itemsize))
    tile_m = _pick_tile_rows(rows, lane, itemsize, sub)
    grid_m = pl.cdiv(rows, tile_m)     # ragged last block masked by Pallas

    block_bytes = tile_m * lane * itemsize
    # in + out, each double-buffered, plus slack; cap well under v7x's 64 MiB.
    vmem_limit = int(min(48 << 20, 2 * 2 * block_bytes + (4 << 20)))

    cost = pl.CostEstimate(
        flops=2 * total,                       # one mul + one add per element
        transcendentals=0,
        bytes_accessed=2 * total * itemsize,   # one read + one write pass
    )

    out2d = pl.pallas_call(
        _scale_shift_kernel,
        out_shape=jax.ShapeDtypeStruct((rows, lane), dtype),
        grid=(grid_m,),
        in_specs=[
            pl.BlockSpec(memory_space=pltpu.SMEM),            # mean (f32)
            pl.BlockSpec(memory_space=pltpu.SMEM),            # stddev (f32)
            pl.BlockSpec((tile_m, lane), lambda i: (i, 0)),   # x row tile
        ],
        out_specs=pl.BlockSpec((tile_m, lane), lambda i: (i, 0)),
        compiler_params=pltpu.CompilerParams(
            dimension_semantics=("parallel",),
            vmem_limit_bytes=vmem_limit,
        ),
        cost_estimate=cost,
    )(mean_arr, std_arr, x2d)

    return out2d.reshape(orig_shape)


if __name__ == "__main__":
    key = jax.random.PRNGKey(0)

    # Dataset statistics (would be registered buffers in schnetpack).
    mean = 1.5
    stddev = 2.0

    # 1) Small schnetpack-like shape (batch, atoms, features) -> fast path.
    B, N, F = 2, 8, 32
    x_small = jax.random.normal(key, (B, N, F), dtype=jnp.float32)
    y_small = jax.block_until_ready(scale_shift(x_small, mean, stddev))
    assert y_small.shape == x_small.shape
    assert jnp.allclose(y_small, x_small * stddev + mean, atol=1e-6, rtol=1e-6)

    # 2) Larger aligned f32 input -> lane-dense Pallas path, multi-step grid.
    x_big = jax.random.normal(jax.random.PRNGKey(0), (8, 512, 256),
                              dtype=jnp.float32)
    y_big = jax.block_until_ready(scale_shift(x_big, mean, stddev))
    assert y_big.shape == x_big.shape
    assert jnp.allclose(y_big, x_big * stddev + mean, atol=1e-6, rtol=1e-6)

    # 3) bf16 input -> Pallas path with f32 compute, cast at store.
    x_bf16 = jax.random.normal(jax.random.PRNGKey(0), (4, 256, 384),
                               dtype=jnp.bfloat16)
    y_bf16 = jax.block_until_ready(scale_shift(x_bf16, mean, stddev))
    ref_bf16 = (x_bf16.astype(jnp.float32) * stddev + mean).astype(jnp.bfloat16)
    assert y_bf16.shape == x_bf16.shape
    assert jnp.allclose(y_bf16.astype(jnp.float32),
                        ref_bf16.astype(jnp.float32), atol=2e-2, rtol=2e-2)

    # 4) Unaligned total (not a multiple of 128) -> clean jnp fallback, no pad.
    x_odd = jax.random.normal(jax.random.PRNGKey(0), (123, 1000),
                              dtype=jnp.float32)
    y_odd = jax.block_until_ready(scale_shift(x_odd, mean, stddev))
    assert y_odd.shape == x_odd.shape
    assert jnp.allclose(y_odd, x_odd * stddev + mean, atol=1e-6, rtol=1e-6)

    print("KERNEL_OK")
</pallas_src>

<mosaic_0001>
module attributes {stable_mosaic.version = 11 : i64} {
  func.func @_scale_shift_kernel(%arg0: i32, %arg1: memref<1x1xf32, #tpu.memory_space<smem>>, %arg2: memref<1x1xf32, #tpu.memory_space<smem>>, %arg3: memref<256x512xf32, #tpu.memory_space<vmem>>, %arg4: memref<256x512xf32, #tpu.memory_space<vmem>>) attributes {dimension_semantics = [#tpu.dimension_semantics<parallel>], iteration_bounds = array<i64: 8>, scalar_prefetch = 0 : i64, scratch_operands = 0 : i64, tpu.core_type = #tpu.core_type<tc>, window_params = [{transform_indices = @transform_0, window_bounds = array<i64: 1, 1>}, {transform_indices = @transform_1, window_bounds = array<i64: 1, 1>}, {transform_indices = @transform_2, window_bounds = array<i64: 256, 512>}, {transform_indices = @transform_3, window_bounds = array<i64: 256, 512>}]} {
    %c0 = arith.constant 0 : index
    %c0_0 = arith.constant 0 : index
    %0 = memref.load %arg1[%c0, %c0_0] : memref<1x1xf32, #tpu.memory_space<smem>>
    %c0_1 = arith.constant 0 : index
    %c0_2 = arith.constant 0 : index
    %1 = memref.load %arg2[%c0_1, %c0_2] : memref<1x1xf32, #tpu.memory_space<smem>>
    %c0_3 = arith.constant 0 : index
    %c0_4 = arith.constant 0 : index
    %2 = vector.load %arg3[%c0_3, %c0_4] : memref<256x512xf32, #tpu.memory_space<vmem>>, vector<256x512xf32>
    %3 = vector.broadcast %1 : f32 to vector<256x512xf32>
    %4 = arith.mulf %2, %3 : vector<256x512xf32>
    %5 = vector.broadcast %0 : f32 to vector<256x512xf32>
    %6 = arith.addf %4, %5 : vector<256x512xf32>
    %c0_5 = arith.constant 0 : index
    %c0_6 = arith.constant 0 : index
    %7 = vector.load %arg4[%c0_5, %c0_6] : memref<256x512xf32, #tpu.memory_space<vmem>>, vector<256x512xf32>
    tpu.vector_store %arg4[%c0_5, %c0_6], %6 {strides = array<i32>} : memref<256x512xf32, #tpu.memory_space<vmem>>, vector<256x512xf32>,
    return
  }
  func.func @transform_0(%arg0: i32) -> (i32, i32) {
    %c0_i32 = arith.constant 0 : i32
    %c0_i32_0 = arith.constant 0 : i32
    %c0_i32_1 = arith.constant 0 : i32
    return %c0_i32, %c0_i32_0 : i32, i32
  }
  func.func @transform_1(%arg0: i32) -> (i32, i32) {
    %c0_i32 = arith.constant 0 : i32
    %c0_i32_0 = arith.constant 0 : i32
    %c0_i32_1 = arith.constant 0 : i32
    return %c0_i32, %c0_i32_0 : i32, i32
  }
  func.func @transform_2(%arg0: i32) -> (i32, i32) {
    %c0_i32 = arith.constant 0 : i32
    %c0_i32_0 = arith.constant 0 : i32
    return %arg0, %c0_i32 : i32, i32
  }
  func.func @transform_3(%arg0: i32) -> (i32, i32) {
    %c0_i32 = arith.constant 0 : i32
    %c0_i32_0 = arith.constant 0 : i32
    return %arg0, %c0_i32 : i32, i32
  }
}

</mosaic_0001>

<bundles_post_ra>
// kernel: tpu_custom_call.1
= control target key start
LH: loop header
LB: loop body
LE: loop exit
PB: predicated region body
PF: predicated region fallthrough
CT: control target
= control target key end

     0   :  { %s1650_s0 = inlined_call_operand.<no memory space> [shape: f32[1,1], index: 0, kind: input, shape index: {}]   ;;  %s1651_s1 = inlined_call_operand.<no memory space> [shape: f32[1,1], index: 1, kind: input, shape index: {}]   ;;  %s1652_s2 = inlined_call_operand.hbm [shape: f32[2048,512], index: 2, kind: input, shape index: {}]   ;;  %s1653_s3 = inlined_call_operand.hbm [shape: f32[2048,512], index: 3, kind: output, shape index: {}]  }
   0x1   :  { %8 = sst [smem:[#allocation2]] %s1650_s0 }
   0x2   :  { %9 = sst [smem:[#allocation3]] %s1651_s1 }
   0x3   :  { %10 = vsyncpa [#allocation5], 0 }
   0x4   :  { %12 = vsyncpa [#allocation5 + $0x1], 0 }
   0x5   :  { %13 = vsyncpa [#allocation6], 0 }
   0x6   :  { %15 = vsyncpa [#allocation6 + $0x1], 0  ;;  %s1000_s16 = smov 0   ;;  %s1002_s17 = smov 0  }
   0x7   :  { %s1004_s18 = smov 0   ;;  %s1006_s19 = smov 0  }
   0x8 LB: > { %s1021_s0 = sadd.s32 4294967295, %s968_s19   ;;  %s802_s1 = sadd.s32 4294967294, %s968_s19   ;;  %s968_s19 = sphi %s1006_s19, %s1662_s19   ;;  %s964_s18 = sphi %s1004_s18, %s1661_s18   ;;  %s960_s17 = sphi %s1002_s17, %s1660_s17   ;;  %s956_s16 = sphi %s1000_s16, %s1659_s16  }
   0x9   : > { %s1025_s20 = sadd.s32 1, %s968_s19   ;;  %s70_s21 = sadd.s32 1, %s964_s18 }
   0xa   : > { %s67_s22 = ssub.s32 %s968_s19, %s1025_s20  ;;  %p77_p0 = scmp.ne.s32.totalorder %s964_s18, %s960_s17 }
   0xb   : > { %p68_p1 = scmp.eq.s32.totalorder %s67_s22, 0  ;;  %p78_p2 = scmp.eq.s32.totalorder %s968_s19, 0 }
   0xc   : > { %p83_p3 = scmp.ne.s32.totalorder %s960_s17, %s956_s16  ;;  %p84_p4 = scmp.eq.s32.totalorder %s1021_s0, 0 }
   0xd   : > { %s1037_s23 = scalar_select %p68_p1, %s964_s18, %s70_s21  }
   0xe   : > { %p1039_p5 = por %p78_p2, %p77_p0  ;;  %p1043_p6 = por %p84_p4, %p83_p3 }
   0xf   : > { %p107_p7 = scmp.eq.s32.totalorder %s1021_s0, 7  ;;  %p113_p8 = scmp.eq.s32.totalorder %s802_s1, 7 }
  0x10   : > { %p834_p9 = scmp.lt.s32.totalorder %s968_s19, 8  ;;  %s139_s28 = sand.u32 1, %s964_s18  }
  0x11   : > { %p1049_p10 = por %p107_p7, %p77_p0  ;;  %p1053_p11 = por %p113_p8, %p83_p3 }
  0x12   : > { %s819_s29 = sshll.u32 %s968_s19, 10  ;;  %s805_s30 = sshll.u32 %s139_s28, 10 }
  0x13   : > { %s149_s6 = scalar_lea.hbm %s1652_s2, %s819_s29  ;;  %s143_s8 = scalar_lea.vmem [#allocation4], %s805_s30 }
  0x14   : > { %s150_s7 = sshll.u32 %s149_s6, 4  ;;  %s152_s9 = sshll.u32 %s143_s8, 4  ;;  %s151_s7 = int_to_ptr.hbm [resolvable:$true] %s150_s7  ;;  %s153_s9 = int_to_ptr.vmem [resolvable:$true] %s152_s9 }
  0x15   : > { %p1064_p12 = pnand %p834_p9, %p1039_p5  ;;  %p809_p13 = scmp.ge.s32.totalorder %s968_s19, 1 }
  0x16   : > { %p160_p0 = scmp.lt.s32.totalorder %s968_s19, 9  ;;  %s140_s11 = scalar_lea.sflag [#allocation5], %s139_s28 }
  0x17   : > { %s872_s12 = sshra.s32 %s151_s7, 4  ;;  %p876_p2 = pneg %p1064_p12  ;;  %s873_s12 = int_to_ptr.hbm [resolvable:$true] %s872_s12 }
  0x18   : > { %s874_s13 = scalar_lea.hbm %s873_s12, 1024  ;;  %s879_s1 = scalar_lea.hbm %s1652_s2, 8192 }
  0x19   : > { %p875_p1 = scmp.ne.s32.totalorder %s873_s12, %s874_s13  ;;  %p880_p5 = scmp.lt.s32.totalorder %s873_s12, %s1652_s2 }
  0x1a   : > { %p881_p7 = scmp.lt.s32.totalorder %s879_s1, %s874_s13 }
  0x1b   : > { %p877_p3 = pnand %p876_p2, %p875_p1 }
  0x1c   : > { %p882_p8 = por %p881_p7, %p880_p5 }
  0x1d   : > { %p878_p4 = pneg %p877_p3 }
  0x1f   : > { %p883_p9 = pnand %p882_p8, %p878_p4 }
  0x21   : > { %886 = shalt.err (!%p883_p9)
}
  0x22   : > { %s970_s24 = smov 512   ;;  %s971_s28 = smov 32  }
  0x23   : > { %829 = dma.hbm_to_vmem [thread:$0]  (!%p1064_p12), %s151_s7, 16384, %s153_s9, %s140_s11, %s970_s24, %s970_s24, %s971_s28  }
  0x24   : > { %p161_p1 = pnand %p809_p13, %p160_p0 }
  0x25   : > { %s1085_s29 = sand.u32 (!%p161_p1), 1, %s960_s17  }
  0x26   : > { %164 = sbr.rel (%p161_p1) target bundleno = 187 (0xbb), region = 32  ;;  %s810_s30 = sshll.u32 (!%p161_p1), %s1085_s29, 10 }
  0x27   : > { %s167_s4 = scalar_lea.sflag (!%p161_p1), [#allocation5], %s1085_s29  ;;  %s1091_s5 = scalar_lea.vmem (!%p161_p1), [#allocation4], %s810_s30 }
  0x2b   : > { %947 = dma.done.wait (%p1043_p6), %s167_s4, 16384  }
  0x2c   : > { %949 = vsyncadd (%p1043_p6), %s167_s4, 4294950912  ;;  %s196_s6 = sld [smem:[#allocation2]]  ;;  %v198_v0 = vld [vmem:[%s1091_s5] sm:$0xff]  ;;  %v199_v2 = vld [vmem:[%s1091_s5 + $0x8] sm:$0xff]  ;;  %s1126_s25 = scalar_lea.vmem [#allocation7], %s810_s30 }
  0x2d   : > { %s197_s7 = sld [smem:[#allocation3]]  ;;  %v200_v3 = vld [vmem:[%s1091_s5 + $0x10] sm:$0xff]  ;;  %v201_v5 = vld [vmem:[%s1091_s5 + $0x18] sm:$0xff]  ;;  %v202_v6 = vld [vmem:[%s1091_s5 + $0x20] sm:$0xff]  ;;  %s821_s8 = sshll.u32 %s1021_s0, 10 }
  0x2e   : > { %v203_v7 = vld [vmem:[%s1091_s5 + $0x28] sm:$0xff]  ;;  %v204_v12 = vld [vmem:[%s1091_s5 + $0x30] sm:$0xff]  ;;  %v205_v13 = vld [vmem:[%s1091_s5 + $0x38] sm:$0xff]  ;;  %s725_s10 = scalar_lea.hbm %s1653_s3, %s821_s8  ;;  %s726_s11 = sshll.u32 %s1126_s25, 4  ;;  %s727_s11 = int_to_ptr.vmem [resolvable:$true] %s726_s11 }
  0x2f   : > { %v206_v16 = vld [vmem:[%s1091_s5 + $0x40] sm:$0xff]  ;;  %v207_v21 = vld [vmem:[%s1091_s5 + $0x48] sm:$0xff]  ;;  %v208_v24 = vld [vmem:[%s1091_s5 + $0x50] sm:$0xff]  ;;  %s728_s12 = sshll.u32 %s725_s10, 4  ;;  %s713_s13 = scalar_lea.sflag [#allocation6], %s1085_s29  ;;  %s729_s12 = int_to_ptr.hbm [resolvable:$true] %s728_s12 }
  0x30   : > { %v209_v27 = vld [vmem:[%s1091_s5 + $0x58] sm:$0xff]  ;;  %v210_v30 = vld [vmem:[%s1091_s5 + $0x60] sm:$0xff]  ;;  %v211_v33 = vld [vmem:[%s1091_s5 + $0x68] sm:$0xff]  ;;  %s916_s14 = sshra.s32 %s729_s12, 4  ;;  %s922_s22 = scalar_lea.hbm %s1653_s3, 8192  ;;  %s917_s14 = int_to_ptr.hbm [resolvable:$true] %s916_s14 }
  0x31   : > { %v212_v36 = vld [vmem:[%s1091_s5 + $0x70] sm:$0xff]  ;;  %v213_v39 = vld [vmem:[%s1091_s5 + $0x78] sm:$0xff]  ;;  %v214_v42 = vld [vmem:[%s1091_s5 + $0x80] sm:$0xff]  ;;  %s918_s15 = scalar_lea.hbm %s917_s14, 1024  ;;  %p923_p0 = scmp.lt.s32.totalorder %s917_s14, %s1653_s3 }
  0x32   : > { %v1098_v1 = vstv %s196_s6  ;;  %v215_v45 = vld [vmem:[%s1091_s5 + $0x88] sm:$0xff]  ;;  %v216_v48 = vld [vmem:[%s1091_s5 + $0x90] sm:$0xff]  ;;  %v217_v51 = vld [vmem:[%s1091_s5 + $0x98] sm:$0xff]  ;;  %p919_p6 = scmp.ne.s32.totalorder %s917_s14, %s918_s15  ;;  %p924_p2 = scmp.lt.s32.totalorder %s922_s22, %s918_s15 }
  0x33   : > { %v1102_v4 = vstv %s197_s7  ;;  %v218_v54 = vld [vmem:[%s1091_s5 + $0xa0] sm:$0xff]  ;;  %v219_v57 = vld [vmem:[%s1091_s5 + $0xa8] sm:$0xff]  ;;  %v220_v60 = vld [vmem:[%s1091_s5 + $0xb0] sm:$0xff] }
  0x34   : > { %v327_v8 = vmul.f32 %v1102_v4, %v198_v0  ;;  %v328_v9 = vmul.f32 %v1102_v4, %v199_v2  ;;  %v329_v10 = vmul.f32 %v1102_v4, %v200_v3  ;;  %v330_v11 = vmul.f32 %v1102_v4, %v201_v5  ;;  %v221_v63 = vld [vmem:[%s1091_s5 + $0xb8] sm:$0xff]  ;;  %v222_v3 = vld [vmem:[%s1091_s5 + $0xc0] sm:$0xff]  ;;  %p920_p12 = pnand %p919_p6, %p1049_p10  ;;  %p925_p3 = por %p924_p2, %p923_p0 }
  0x35   : > { %v331_v14 = vmul.f32 %v1102_v4, %v202_v6  ;;  %v332_v15 = vmul.f32 %v1102_v4, %v203_v7  ;;  %v333_v20 = vmul.f32 %v1102_v4, %v204_v12  ;;  %v334_v23 = vmul.f32 %v1102_v4, %v205_v13  ;;  %v223_v7 = vld [vmem:[%s1091_s5 + $0xc8] sm:$0xff]  ;;  %v225_v13 = vld [vmem:[%s1091_s5 + $0xd8] sm:$0xff] }
  0x36   : > { %v456_v17 = vadd.f32 %v1098_v1, %v327_v8  ;;  %v457_v18 = vadd.f32 %v1098_v1, %v328_v9  ;;  %v458_v19 = vadd.f32 %v1098_v1, %v329_v10  ;;  %v459_v22 = vadd.f32 %v1098_v1, %v330_v11  ;;  %v224_v10 = vld [vmem:[%s1091_s5 + $0xd0] sm:$0xff]  ;;  %p921_p13 = pneg %p920_p12 }
  0x37   : > { %v460_v25 = vadd.f32 %v1098_v1, %v331_v14  ;;  %v335_v26 = vmul.f32 %v1102_v4, %v206_v16  ;;  %v461_v28 = vadd.f32 %v1098_v1, %v332_v15  ;;  %v336_v29 = vmul.f32 %v1102_v4, %v207_v21  ;;  %v226_v16 = vld [vmem:[%s1091_s5 + $0xe0] sm:$0xff] }
  0x38   : > { %584 = vst [vmem:[%s1126_s25] sm:$0xff] %v456_v17  ;;  %v462_v31 = vadd.f32 %v1098_v1, %v333_v20  ;;  %v337_v32 = vmul.f32 %v1102_v4, %v208_v24  ;;  %v463_v34 = vadd.f32 %v1098_v1, %v334_v23  ;;  %v338_v35 = vmul.f32 %v1102_v4, %v209_v27  ;;  %p926_p4 = pnand %p925_p3, %p921_p13 }
  0x39   : > { %585 = vst [vmem:[%s1126_s25 + $0x8] sm:$0xff] %v457_v18  ;;  %v464_v37 = vadd.f32 %v1098_v1, %v335_v26  ;;  %v339_v38 = vmul.f32 %v1102_v4, %v210_v30  ;;  %v465_v40 = vadd.f32 %v1098_v1, %v336_v29  ;;  %v340_v41 = vmul.f32 %v1102_v4, %v211_v33 }
  0x3a   : > { %586 = vst [vmem:[%s1126_s25 + $0x10] sm:$0xff] %v458_v19  ;;  %v466_v43 = vadd.f32 %v1098_v1, %v337_v32  ;;  %v341_v44 = vmul.f32 %v1102_v4, %v212_v36  ;;  %v467_v46 = vadd.f32 %v1098_v1, %v338_v35  ;;  %v342_v47 = vmul.f32 %v1102_v4, %v213_v39  ;;  %v227_v19 = vld [vmem:[%s1091_s5 + $0xe8] sm:$0xff] }
  0x3b   : > { %587 = vst [vmem:[%s1126_s25 + $0x18] sm:$0xff] %v459_v22  ;;  %v468_v49 = vadd.f32 %v1098_v1, %v339_v38  ;;  %v343_v50 = vmul.f32 %v1102_v4, %v214_v42  ;;  %v469_v52 = vadd.f32 %v1098_v1, %v340_v41  ;;  %v344_v53 = vmul.f32 %v1102_v4, %v215_v45  ;;  %v228_v22 = vld [vmem:[%s1091_s5 + $0xf0] sm:$0xff] }
  0x3c   : > { %588 = vst [vmem:[%s1126_s25 + $0x20] sm:$0xff] %v460_v25  ;;  %v470_v55 = vadd.f32 %v1098_v1, %v341_v44  ;;  %v345_v56 = vmul.f32 %v1102_v4, %v216_v48  ;;  %v471_v58 = vadd.f32 %v1098_v1, %v342_v47  ;;  %v346_v59 = vmul.f32 %v1102_v4, %v217_v51  ;;  %v229_v25 = vld [vmem:[%s1091_s5 + $0xf8] sm:$0xff] }
  0x3d   : > { %589 = vst [vmem:[%s1126_s25 + $0x28] sm:$0xff] %v461_v28  ;;  %v472_v61 = vadd.f32 %v1098_v1, %v343_v50  ;;  %v347_v62 = vmul.f32 %v1102_v4, %v218_v54  ;;  %v473_v0 = vadd.f32 %v1098_v1, %v344_v53  ;;  %v348_v2 = vmul.f32 %v1102_v4, %v219_v57  ;;  %v230_v28 = vld [vmem:[%s1091_s5 + $0x100] sm:$0xff] }
  0x3e   : > { %590 = vst [vmem:[%s1126_s25 + $0x30] sm:$0xff] %v462_v31  ;;  %v474_v5 = vadd.f32 %v1098_v1, %v345_v56  ;;  %v349_v6 = vmul.f32 %v1102_v4, %v220_v60  ;;  %v475_v8 = vadd.f32 %v1098_v1, %v346_v59  ;;  %v350_v9 = vmul.f32 %v1102_v4, %v221_v63  ;;  %v231_v31 = vld [vmem:[%s1091_s5 + $0x108] sm:$0xff] }
  0x3f   : > { %591 = vst [vmem:[%s1126_s25 + $0x38] sm:$0xff] %v463_v34  ;;  %v476_v11 = vadd.f32 %v1098_v1, %v347_v62  ;;  %v351_v12 = vmul.f32 %v1102_v4, %v222_v3  ;;  %v477_v14 = vadd.f32 %v1098_v1, %v348_v2  ;;  %v352_v15 = vmul.f32 %v1102_v4, %v223_v7  ;;  %v232_v34 = vld [vmem:[%s1091_s5 + $0x110] sm:$0xff] }
  0x40   : > { %592 = vst [vmem:[%s1126_s25 + $0x40] sm:$0xff] %v464_v37  ;;  %v478_v17 = vadd.f32 %v1098_v1, %v349_v6  ;;  %v353_v18 = vmul.f32 %v1102_v4, %v224_v10  ;;  %v479_v20 = vadd.f32 %v1098_v1, %v350_v9  ;;  %v354_v21 = vmul.f32 %v1102_v4, %v225_v13  ;;  %v233_v37 = vld [vmem:[%s1091_s5 + $0x118] sm:$0xff] }
  0x41   : > { %593 = vst [vmem:[%s1126_s25 + $0x48] sm:$0xff] %v465_v40  ;;  %v480_v23 = vadd.f32 %v1098_v1, %v351_v12  ;;  %v355_v24 = vmul.f32 %v1102_v4, %v226_v16  ;;  %v481_v26 = vadd.f32 %v1098_v1, %v352_v15  ;;  %v356_v27 = vmul.f32 %v1102_v4, %v227_v19  ;;  %v234_v40 = vld [vmem:[%s1091_s5 + $0x120] sm:$0xff] }
  0x42   : > { %594 = vst [vmem:[%s1126_s25 + $0x50] sm:$0xff] %v466_v43  ;;  %v482_v29 = vadd.f32 %v1098_v1, %v353_v18  ;;  %v357_v30 = vmul.f32 %v1102_v4, %v228_v22  ;;  %v483_v32 = vadd.f32 %v1098_v1, %v354_v21  ;;  %v358_v33 = vmul.f32 %v1102_v4, %v229_v25  ;;  %v235_v43 = vld [vmem:[%s1091_s5 + $0x128] sm:$0xff] }
  0x43   : > { %595 = vst [vmem:[%s1126_s25 + $0x58] sm:$0xff] %v467_v46  ;;  %v484_v35 = vadd.f32 %v1098_v1, %v355_v24  ;;  %v359_v36 = vmul.f32 %v1102_v4, %v230_v28  ;;  %v485_v38 = vadd.f32 %v1098_v1, %v356_v27  ;;  %v360_v39 = vmul.f32 %v1102_v4, %v231_v31  ;;  %v236_v46 = vld [vmem:[%s1091_s5 + $0x130] sm:$0xff] }
  0x44   : > { %596 = vst [vmem:[%s1126_s25 + $0x60] sm:$0xff] %v468_v49  ;;  %v486_v41 = vadd.f32 %v1098_v1, %v357_v30  ;;  %v361_v42 = vmul.f32 %v1102_v4, %v232_v34  ;;  %v487_v44 = vadd.f32 %v1098_v1, %v358_v33  ;;  %v362_v45 = vmul.f32 %v1102_v4, %v233_v37  ;;  %v237_v49 = vld [vmem:[%s1091_s5 + $0x138] sm:$0xff] }
  0x45   : > { %597 = vst [vmem:[%s1126_s25 + $0x68] sm:$0xff] %v469_v52  ;;  %v488_v47 = vadd.f32 %v1098_v1, %v359_v36  ;;  %v363_v48 = vmul.f32 %v1102_v4, %v234_v40  ;;  %v489_v50 = vadd.f32 %v1098_v1, %v360_v39  ;;  %v364_v51 = vmul.f32 %v1102_v4, %v235_v43  ;;  %v238_v52 = vld [vmem:[%s1091_s5 + $0x140] sm:$0xff] }
  0x46   : > { %598 = vst [vmem:[%s1126_s25 + $0x70] sm:$0xff] %v470_v55  ;;  %v490_v53 = vadd.f32 %v1098_v1, %v361_v42  ;;  %v365_v54 = vmul.f32 %v1102_v4, %v236_v46  ;;  %v239_v55 = vld [vmem:[%s1091_s5 + $0x148] sm:$0xff]  ;;  %v491_v56 = vadd.f32 %v1098_v1, %v362_v45  ;;  %v366_v57 = vmul.f32 %v1102_v4, %v237_v49 }
  0x47   : > { %599 = vst [vmem:[%s1126_s25 + $0x78] sm:$0xff] %v471_v58  ;;  %v240_v58 = vld [vmem:[%s1091_s5 + $0x150] sm:$0xff]  ;;  %v492_v59 = vadd.f32 %v1098_v1, %v363_v48  ;;  %v367_v60 = vmul.f32 %v1102_v4, %v238_v52  ;;  %v493_v62 = vadd.f32 %v1098_v1, %v364_v51  ;;  %v368_v63 = vmul.f32 %v1102_v4, %v239_v55 }
  0x48   : > { %600 = vst [vmem:[%s1126_s25 + $0x80] sm:$0xff] %v472_v61  ;;  %v241_v61 = vld [vmem:[%s1091_s5 + $0x158] sm:$0xff]  ;;  %v494_v2 = vadd.f32 %v1098_v1, %v365_v54  ;;  %v369_v3 = vmul.f32 %v1102_v4, %v240_v58  ;;  %v495_v6 = vadd.f32 %v1098_v1, %v366_v57 }
  0x49   : > { %601 = vst [vmem:[%s1126_s25 + $0x88] sm:$0xff] %v473_v0  ;;  %v242_v0 = vld [vmem:[%s1091_s5 + $0x160] sm:$0xff]  ;;  %v370_v7 = vmul.f32 %v1102_v4, %v241_v61  ;;  %v496_v9 = vadd.f32 %v1098_v1, %v367_v60  ;;  %v497_v12 = vadd.f32 %v1098_v1, %v368_v63 }
  0x4a   : > { %602 = vst [vmem:[%s1126_s25 + $0x90] sm:$0xff] %v474_v5  ;;  %v243_v5 = vld [vmem:[%s1091_s5 + $0x168] sm:$0xff]  ;;  %v371_v10 = vmul.f32 %v1102_v4, %v242_v0  ;;  %v498_v15 = vadd.f32 %v1098_v1, %v369_v3 }
  0x4b   : > { %603 = vst [vmem:[%s1126_s25 + $0x98] sm:$0xff] %v475_v8  ;;  %v244_v8 = vld [vmem:[%s1091_s5 + $0x170] sm:$0xff]  ;;  %v372_v13 = vmul.f32 %v1102_v4, %v243_v5  ;;  %v499_v18 = vadd.f32 %v1098_v1, %v370_v7 }
  0x4c   : > { %604 = vst [vmem:[%s1126_s25 + $0xa0] sm:$0xff] %v476_v11  ;;  %v245_v11 = vld [vmem:[%s1091_s5 + $0x178] sm:$0xff]  ;;  %v373_v16 = vmul.f32 %v1102_v4, %v244_v8  ;;  %v500_v21 = vadd.f32 %v1098_v1, %v371_v10 }
  0x4d   : > { %605 = vst [vmem:[%s1126_s25 + $0xa8] sm:$0xff] %v477_v14  ;;  %v246_v14 = vld [vmem:[%s1091_s5 + $0x180] sm:$0xff]  ;;  %v374_v19 = vmul.f32 %v1102_v4, %v245_v11  ;;  %v501_v24 = vadd.f32 %v1098_v1, %v372_v13 }
  0x4e   : > { %606 = vst [vmem:[%s1126_s25 + $0xb0] sm:$0xff] %v478_v17  ;;  %v247_v17 = vld [vmem:[%s1091_s5 + $0x188] sm:$0xff]  ;;  %v375_v22 = vmul.f32 %v1102_v4, %v246_v14  ;;  %v502_v27 = vadd.f32 %v1098_v1, %v373_v16 }
  0x4f   : > { %607 = vst [vmem:[%s1126_s25 + $0xb8] sm:$0xff] %v479_v20  ;;  %v248_v20 = vld [vmem:[%s1091_s5 + $0x190] sm:$0xff]  ;;  %v376_v25 = vmul.f32 %v1102_v4, %v247_v17  ;;  %v503_v30 = vadd.f32 %v1098_v1, %v374_v19 }
  0x50   : > { %608 = vst [vmem:[%s1126_s25 + $0xc0] sm:$0xff] %v480_v23  ;;  %v249_v23 = vld [vmem:[%s1091_s5 + $0x198] sm:$0xff]  ;;  %v377_v28 = vmul.f32 %v1102_v4, %v248_v20  ;;  %v504_v33 = vadd.f32 %v1098_v1, %v375_v22 }
  0x51   : > { %609 = vst [vmem:[%s1126_s25 + $0xc8] sm:$0xff] %v481_v26  ;;  %v250_v26 = vld [vmem:[%s1091_s5 + $0x1a0] sm:$0xff]  ;;  %v378_v31 = vmul.f32 %v1102_v4, %v249_v23  ;;  %v505_v36 = vadd.f32 %v1098_v1, %v376_v25 }
  0x52   : > { %610 = vst [vmem:[%s1126_s25 + $0xd0] sm:$0xff] %v482_v29  ;;  %v251_v29 = vld [vmem:[%s1091_s5 + $0x1a8] sm:$0xff]  ;;  %v379_v34 = vmul.f32 %v1102_v4, %v250_v26  ;;  %v506_v39 = vadd.f32 %v1098_v1, %v377_v28 }
  0x53   : > { %611 = vst [vmem:[%s1126_s25 + $0xd8] sm:$0xff] %v483_v32  ;;  %v252_v32 = vld [vmem:[%s1091_s5 + $0x1b0] sm:$0xff]  ;;  %v380_v37 = vmul.f32 %v1102_v4, %v251_v29  ;;  %v507_v42 = vadd.f32 %v1098_v1, %v378_v31 }
  0x54   : > { %612 = vst [vmem:[%s1126_s25 + $0xe0] sm:$0xff] %v484_v35  ;;  %v253_v35 = vld [vmem:[%s1091_s5 + $0x1b8] sm:$0xff]  ;;  %v381_v40 = vmul.f32 %v1102_v4, %v252_v32  ;;  %v508_v45 = vadd.f32 %v1098_v1, %v379_v34 }
  0x55   : > { %613 = vst [vmem:[%s1126_s25 + $0xe8] sm:$0xff] %v485_v38  ;;  %v254_v38 = vld [vmem:[%s1091_s5 + $0x1c0] sm:$0xff]  ;;  %v382_v43 = vmul.f32 %v1102_v4, %v253_v35  ;;  %v509_v48 = vadd.f32 %v1098_v1, %v380_v37 }
  0x56   : > { %614 = vst [vmem:[%s1126_s25 + $0xf0] sm:$0xff] %v486_v41  ;;  %v255_v41 = vld [vmem:[%s1091_s5 + $0x1c8] sm:$0xff]  ;;  %v383_v46 = vmul.f32 %v1102_v4, %v254_v38  ;;  %v510_v51 = vadd.f32 %v1098_v1, %v381_v40 }
  0x57   : > { %615 = vst [vmem:[%s1126_s25 + $0xf8] sm:$0xff] %v487_v44  ;;  %v256_v44 = vld [vmem:[%s1091_s5 + $0x1d0] sm:$0xff]  ;;  %v384_v49 = vmul.f32 %v1102_v4, %v255_v41  ;;  %v511_v54 = vadd.f32 %v1098_v1, %v382_v43 }
  0x58   : > { %616 = vst [vmem:[%s1126_s25 + $0x100] sm:$0xff] %v488_v47  ;;  %v257_v47 = vld [vmem:[%s1091_s5 + $0x1d8] sm:$0xff]  ;;  %v385_v52 = vmul.f32 %v1102_v4, %v256_v44  ;;  %v512_v57 = vadd.f32 %v1098_v1, %v383_v46 }
  0x59   : > { %617 = vst [vmem:[%s1126_s25 + $0x108] sm:$0xff] %v489_v50  ;;  %v258_v50 = vld [vmem:[%s1091_s5 + $0x1e0] sm:$0xff]  ;;  %v386_v55 = vmul.f32 %v1102_v4, %v257_v47  ;;  %v513_v60 = vadd.f32 %v1098_v1, %v384_v49 }
  0x5a   : > { %618 = vst [vmem:[%s1126_s25 + $0x110] sm:$0xff] %v490_v53  ;;  %v259_v53 = vld [vmem:[%s1091_s5 + $0x1e8] sm:$0xff]  ;;  %v387_v58 = vmul.f32 %v1102_v4, %v258_v50  ;;  %v514_v63 = vadd.f32 %v1098_v1, %v385_v52 }
  0x5b   : > { %619 = vst [vmem:[%s1126_s25 + $0x118] sm:$0xff] %v491_v56  ;;  %v260_v56 = vld [vmem:[%s1091_s5 + $0x1f0] sm:$0xff]  ;;  %v388_v61 = vmul.f32 %v1102_v4, %v259_v53  ;;  %v515_v3 = vadd.f32 %v1098_v1, %v386_v55 }
  0x5c   : > { %620 = vst [vmem:[%s1126_s25 + $0x120] sm:$0xff] %v492_v59  ;;  %v261_v59 = vld [vmem:[%s1091_s5 + $0x1f8] sm:$0xff]  ;;  %v389_v0 = vmul.f32 %v1102_v4, %v260_v56  ;;  %v516_v7 = vadd.f32 %v1098_v1, %v387_v58 }
  0x5d   : > { %621 = vst [vmem:[%s1126_s25 + $0x128] sm:$0xff] %v493_v62  ;;  %v262_v62 = vld [vmem:[%s1091_s5 + $0x200] sm:$0xff]  ;;  %v390_v5 = vmul.f32 %v1102_v4, %v261_v59  ;;  %v517_v10 = vadd.f32 %v1098_v1, %v388_v61 }
  0x5e   : > { %622 = vst [vmem:[%s1126_s25 + $0x130] sm:$0xff] %v494_v2  ;;  %v263_v2 = vld [vmem:[%s1091_s5 + $0x208] sm:$0xff]  ;;  %v391_v8 = vmul.f32 %v1102_v4, %v262_v62  ;;  %v518_v13 = vadd.f32 %v1098_v1, %v389_v0 }
  0x5f   : > { %623 = vst [vmem:[%s1126_s25 + $0x138] sm:$0xff] %v495_v6  ;;  %v264_v6 = vld [vmem:[%s1091_s5 + $0x210] sm:$0xff]  ;;  %v392_v11 = vmul.f32 %v1102_v4, %v263_v2  ;;  %v519_v16 = vadd.f32 %v1098_v1, %v390_v5 }
  0x60   : > { %624 = vst [vmem:[%s1126_s25 + $0x140] sm:$0xff] %v496_v9  ;;  %v265_v9 = vld [vmem:[%s1091_s5 + $0x218] sm:$0xff]  ;;  %v393_v14 = vmul.f32 %v1102_v4, %v264_v6  ;;  %v520_v19 = vadd.f32 %v1098_v1, %v391_v8 }
  0x61   : > { %625 = vst [vmem:[%s1126_s25 + $0x148] sm:$0xff] %v497_v12  ;;  %v266_v12 = vld [vmem:[%s1091_s5 + $0x220] sm:$0xff]  ;;  %v394_v17 = vmul.f32 %v1102_v4, %v265_v9  ;;  %v521_v22 = vadd.f32 %v1098_v1, %v392_v11 }
  0x62   : > { %626 = vst [vmem:[%s1126_s25 + $0x150] sm:$0xff] %v498_v15  ;;  %v267_v15 = vld [vmem:[%s1091_s5 + $0x228] sm:$0xff]  ;;  %v395_v20 = vmul.f32 %v1102_v4, %v266_v12  ;;  %v522_v25 = vadd.f32 %v1098_v1, %v393_v14 }
  0x63   : > { %627 = vst [vmem:[%s1126_s25 + $0x158] sm:$0xff] %v499_v18  ;;  %v268_v18 = vld [vmem:[%s1091_s5 + $0x230] sm:$0xff]  ;;  %v396_v23 = vmul.f32 %v1102_v4, %v267_v15  ;;  %v523_v28 = vadd.f32 %v1098_v1, %v394_v17 }
  0x64   : > { %628 = vst [vmem:[%s1126_s25 + $0x160] sm:$0xff] %v500_v21  ;;  %v269_v21 = vld [vmem:[%s1091_s5 + $0x238] sm:$0xff]  ;;  %v397_v26 = vmul.f32 %v1102_v4, %v268_v18  ;;  %v524_v31 = vadd.f32 %v1098_v1, %v395_v20 }
  0x65   : > { %629 = vst [vmem:[%s1126_s25 + $0x168] sm:$0xff] %v501_v24  ;;  %v270_v24 = vld [vmem:[%s1091_s5 + $0x240] sm:$0xff]  ;;  %v398_v29 = vmul.f32 %v1102_v4, %v269_v21  ;;  %v525_v34 = vadd.f32 %v1098_v1, %v396_v23 }
  0x66   : > { %630 = vst [vmem:[%s1126_s25 + $0x170] sm:$0xff] %v502_v27  ;;  %v271_v27 = vld [vmem:[%s1091_s5 + $0x248] sm:$0xff]  ;;  %v399_v32 = vmul.f32 %v1102_v4, %v270_v24  ;;  %v526_v37 = vadd.f32 %v1098_v1, %v397_v26 }
  0x67   : > { %631 = vst [vmem:[%s1126_s25 + $0x178] sm:$0xff] %v503_v30  ;;  %v272_v30 = vld [vmem:[%s1091_s5 + $0x250] sm:$0xff]  ;;  %v400_v35 = vmul.f32 %v1102_v4, %v271_v27  ;;  %v527_v40 = vadd.f32 %v1098_v1, %v398_v29 }
  0x68   : > { %632 = vst [vmem:[%s1126_s25 + $0x180] sm:$0xff] %v504_v33  ;;  %v273_v33 = vld [vmem:[%s1091_s5 + $0x258] sm:$0xff]  ;;  %v401_v38 = vmul.f32 %v1102_v4, %v272_v30  ;;  %v528_v43 = vadd.f32 %v1098_v1, %v399_v32 }
  0x69   : > { %633 = vst [vmem:[%s1126_s25 + $0x188] sm:$0xff] %v505_v36  ;;  %v274_v36 = vld [vmem:[%s1091_s5 + $0x260] sm:$0xff]  ;;  %v402_v41 = vmul.f32 %v1102_v4, %v273_v33  ;;  %v529_v46 = vadd.f32 %v1098_v1, %v400_v35 }
  0x6a   : > { %634 = vst [vmem:[%s1126_s25 + $0x190] sm:$0xff] %v506_v39  ;;  %v275_v39 = vld [vmem:[%s1091_s5 + $0x268] sm:$0xff]  ;;  %v403_v44 = vmul.f32 %v1102_v4, %v274_v36  ;;  %v530_v49 = vadd.f32 %v1098_v1, %v401_v38 }
  0x6b   : > { %635 = vst [vmem:[%s1126_s25 + $0x198] sm:$0xff] %v507_v42  ;;  %v276_v42 = vld [vmem:[%s1091_s5 + $0x270] sm:$0xff]  ;;  %v404_v47 = vmul.f32 %v1102_v4, %v275_v39  ;;  %v531_v52 = vadd.f32 %v1098_v1, %v402_v41 }
  0x6c   : > { %636 = vst [vmem:[%s1126_s25 + $0x1a0] sm:$0xff] %v508_v45  ;;  %v277_v45 = vld [vmem:[%s1091_s5 + $0x278] sm:$0xff]  ;;  %v405_v50 = vmul.f32 %v1102_v4, %v276_v42  ;;  %v532_v55 = vadd.f32 %v1098_v1, %v403_v44 }
  0x6d   : > { %637 = vst [vmem:[%s1126_s25 + $0x1a8] sm:$0xff] %v509_v48  ;;  %v278_v48 = vld [vmem:[%s1091_s5 + $0x280] sm:$0xff]  ;;  %v406_v53 = vmul.f32 %v1102_v4, %v277_v45  ;;  %v533_v58 = vadd.f32 %v1098_v1, %v404_v47 }
  0x6e   : > { %638 = vst [vmem:[%s1126_s25 + $0x1b0] sm:$0xff] %v510_v51  ;;  %v279_v51 = vld [vmem:[%s1091_s5 + $0x288] sm:$0xff]  ;;  %v407_v56 = vmul.f32 %v1102_v4, %v278_v48  ;;  %v534_v61 = vadd.f32 %v1098_v1, %v405_v50 }
  0x6f   : > { %639 = vst [vmem:[%s1126_s25 + $0x1b8] sm:$0xff] %v511_v54  ;;  %v280_v54 = vld [vmem:[%s1091_s5 + $0x290] sm:$0xff]  ;;  %v408_v59 = vmul.f32 %v1102_v4, %v279_v51  ;;  %v535_v0 = vadd.f32 %v1098_v1, %v406_v53 }
  0x70   : > { %640 = vst [vmem:[%s1126_s25 + $0x1c0] sm:$0xff] %v512_v57  ;;  %v281_v57 = vld [vmem:[%s1091_s5 + $0x298] sm:$0xff]  ;;  %v409_v62 = vmul.f32 %v1102_v4, %v280_v54  ;;  %v536_v5 = vadd.f32 %v1098_v1, %v407_v56 }
  0x71   : > { %641 = vst [vmem:[%s1126_s25 + $0x1c8] sm:$0xff] %v513_v60  ;;  %v282_v60 = vld [vmem:[%s1091_s5 + $0x2a0] sm:$0xff]  ;;  %v410_v2 = vmul.f32 %v1102_v4, %v281_v57  ;;  %v537_v8 = vadd.f32 %v1098_v1, %v408_v59 }
  0x72   : > { %642 = vst [vmem:[%s1126_s25 + $0x1d0] sm:$0xff] %v514_v63  ;;  %v283_v63 = vld [vmem:[%s1091_s5 + $0x2a8] sm:$0xff]  ;;  %v411_v6 = vmul.f32 %v1102_v4, %v282_v60  ;;  %v538_v11 = vadd.f32 %v1098_v1, %v409_v62 }
  0x73   : > { %643 = vst [vmem:[%s1126_s25 + $0x1d8] sm:$0xff] %v515_v3  ;;  %v284_v3 = vld [vmem:[%s1091_s5 + $0x2b0] sm:$0xff]  ;;  %v412_v9 = vmul.f32 %v1102_v4, %v283_v63  ;;  %v539_v14 = vadd.f32 %v1098_v1, %v410_v2 }
  0x74   : > { %644 = vst [vmem:[%s1126_s25 + $0x1e0] sm:$0xff] %v516_v7  ;;  %v285_v7 = vld [vmem:[%s1091_s5 + $0x2b8] sm:$0xff]  ;;  %v413_v12 = vmul.f32 %v1102_v4, %v284_v3  ;;  %v540_v17 = vadd.f32 %v1098_v1, %v411_v6 }
  0x75   : > { %645 = vst [vmem:[%s1126_s25 + $0x1e8] sm:$0xff] %v517_v10  ;;  %v286_v10 = vld [vmem:[%s1091_s5 + $0x2c0] sm:$0xff]  ;;  %v414_v15 = vmul.f32 %v1102_v4, %v285_v7  ;;  %v541_v20 = vadd.f32 %v1098_v1, %v412_v9 }
  0x76   : > { %646 = vst [vmem:[%s1126_s25 + $0x1f0] sm:$0xff] %v518_v13  ;;  %v287_v13 = vld [vmem:[%s1091_s5 + $0x2c8] sm:$0xff]  ;;  %v415_v18 = vmul.f32 %v1102_v4, %v286_v10  ;;  %v542_v23 = vadd.f32 %v1098_v1, %v413_v12 }
  0x77   : > { %647 = vst [vmem:[%s1126_s25 + $0x1f8] sm:$0xff] %v519_v16  ;;  %v288_v16 = vld [vmem:[%s1091_s5 + $0x2d0] sm:$0xff]  ;;  %v416_v21 = vmul.f32 %v1102_v4, %v287_v13  ;;  %v543_v26 = vadd.f32 %v1098_v1, %v414_v15 }
  0x78   : > { %648 = vst [vmem:[%s1126_s25 + $0x200] sm:$0xff] %v520_v19  ;;  %v289_v19 = vld [vmem:[%s1091_s5 + $0x2d8] sm:$0xff]  ;;  %v417_v24 = vmul.f32 %v1102_v4, %v288_v16  ;;  %v544_v29 = vadd.f32 %v1098_v1, %v415_v18 }
  0x79   : > { %649 = vst [vmem:[%s1126_s25 + $0x208] sm:$0xff] %v521_v22  ;;  %v290_v22 = vld [vmem:[%s1091_s5 + $0x2e0] sm:$0xff]  ;;  %v418_v27 = vmul.f32 %v1102_v4, %v289_v19  ;;  %v545_v32 = vadd.f32 %v1098_v1, %v416_v21 }
  0x7a   : > { %650 = vst [vmem:[%s1126_s25 + $0x210] sm:$0xff] %v522_v25  ;;  %v291_v25 = vld [vmem:[%s1091_s5 + $0x2e8] sm:$0xff]  ;;  %v419_v30 = vmul.f32 %v1102_v4, %v290_v22  ;;  %v546_v35 = vadd.f32 %v1098_v1, %v417_v24 }
  0x7b   : > { %651 = vst [vmem:[%s1126_s25 + $0x218] sm:$0xff] %v523_v28  ;;  %v292_v28 = vld [vmem:[%s1091_s5 + $0x2f0] sm:$0xff]  ;;  %v420_v33 = vmul.f32 %v1102_v4, %v291_v25  ;;  %v547_v38 = vadd.f32 %v1098_v1, %v418_v27 }
  0x7c   : > { %652 = vst [vmem:[%s1126_s25 + $0x220] sm:$0xff] %v524_v31  ;;  %v293_v31 = vld [vmem:[%s1091_s5 + $0x2f8] sm:$0xff]  ;;  %v421_v36 = vmul.f32 %v1102_v4, %v292_v28  ;;  %v548_v41 = vadd.f32 %v1098_v1, %v419_v30 }
  0x7d   : > { %653 = vst [vmem:[%s1126_s25 + $0x228] sm:$0xff] %v525_v34  ;;  %v294_v34 = vld [vmem:[%s1091_s5 + $0x300] sm:$0xff]  ;;  %v422_v39 = vmul.f32 %v1102_v4, %v293_v31  ;;  %v549_v44 = vadd.f32 %v1098_v1, %v420_v33 }
  0x7e   : > { %654 = vst [vmem:[%s1126_s25 + $0x230] sm:$0xff] %v526_v37  ;;  %v295_v37 = vld [vmem:[%s1091_s5 + $0x308] sm:$0xff]  ;;  %v423_v42 = vmul.f32 %v1102_v4, %v294_v34  ;;  %v550_v47 = vadd.f32 %v1098_v1, %v421_v36 }
  0x7f   : > { %655 = vst [vmem:[%s1126_s25 + $0x238] sm:$0xff] %v527_v40  ;;  %v296_v40 = vld [vmem:[%s1091_s5 + $0x310] sm:$0xff]  ;;  %v424_v45 = vmul.f32 %v1102_v4, %v295_v37  ;;  %v551_v50 = vadd.f32 %v1098_v1, %v422_v39 }
  0x80   : > { %656 = vst [vmem:[%s1126_s25 + $0x240] sm:$0xff] %v528_v43  ;;  %v297_v43 = vld [vmem:[%s1091_s5 + $0x318] sm:$0xff]  ;;  %v425_v48 = vmul.f32 %v1102_v4, %v296_v40  ;;  %v552_v53 = vadd.f32 %v1098_v1, %v423_v42 }
  0x81   : > { %657 = vst [vmem:[%s1126_s25 + $0x248] sm:$0xff] %v529_v46  ;;  %v298_v46 = vld [vmem:[%s1091_s5 + $0x320] sm:$0xff]  ;;  %v426_v51 = vmul.f32 %v1102_v4, %v297_v43  ;;  %v553_v56 = vadd.f32 %v1098_v1, %v424_v45 }
  0x82   : > { %658 = vst [vmem:[%s1126_s25 + $0x250] sm:$0xff] %v530_v49  ;;  %v299_v49 = vld [vmem:[%s1091_s5 + $0x328] sm:$0xff]  ;;  %v427_v54 = vmul.f32 %v1102_v4, %v298_v46  ;;  %v554_v59 = vadd.f32 %v1098_v1, %v425_v48 }
  0x83   : > { %659 = vst [vmem:[%s1126_s25 + $0x258] sm:$0xff] %v531_v52  ;;  %v300_v52 = vld [vmem:[%s1091_s5 + $0x330] sm:$0xff]  ;;  %v428_v57 = vmul.f32 %v1102_v4, %v299_v49  ;;  %v555_v62 = vadd.f32 %v1098_v1, %v426_v51 }
  0x84   : > { %660 = vst [vmem:[%s1126_s25 + $0x260] sm:$0xff] %v532_v55  ;;  %v301_v55 = vld [vmem:[%s1091_s5 + $0x338] sm:$0xff]  ;;  %v429_v60 = vmul.f32 %v1102_v4, %v300_v52  ;;  %v556_v2 = vadd.f32 %v1098_v1, %v427_v54 }
  0x85   : > { %661 = vst [vmem:[%s1126_s25 + $0x268] sm:$0xff] %v533_v58  ;;  %v302_v58 = vld [vmem:[%s1091_s5 + $0x340] sm:$0xff]  ;;  %v430_v63 = vmul.f32 %v1102_v4, %v301_v55  ;;  %v557_v6 = vadd.f32 %v1098_v1, %v428_v57 }
  0x86   : > { %662 = vst [vmem:[%s1126_s25 + $0x270] sm:$0xff] %v534_v61  ;;  %v303_v61 = vld [vmem:[%s1091_s5 + $0x348] sm:$0xff]  ;;  %v431_v3 = vmul.f32 %v1102_v4, %v302_v58  ;;  %v558_v9 = vadd.f32 %v1098_v1, %v429_v60 }
  0x87   : > { %663 = vst [vmem:[%s1126_s25 + $0x278] sm:$0xff] %v535_v0  ;;  %v304_v0 = vld [vmem:[%s1091_s5 + $0x350] sm:$0xff]  ;;  %v432_v7 = vmul.f32 %v1102_v4, %v303_v61  ;;  %v559_v12 = vadd.f32 %v1098_v1, %v430_v63 }
  0x88   : > { %664 = vst [vmem:[%s1126_s25 + $0x280] sm:$0xff] %v536_v5  ;;  %v305_v5 = vld [vmem:[%s1091_s5 + $0x358] sm:$0xff]  ;;  %v433_v10 = vmul.f32 %v1102_v4, %v304_v0  ;;  %v560_v15 = vadd.f32 %v1098_v1, %v431_v3 }
  0x89   : > { %665 = vst [vmem:[%s1126_s25 + $0x288] sm:$0xff] %v537_v8  ;;  %v306_v8 = vld [vmem:[%s1091_s5 + $0x360] sm:$0xff]  ;;  %v434_v13 = vmul.f32 %v1102_v4, %v305_v5  ;;  %v561_v18 = vadd.f32 %v1098_v1, %v432_v7 }
  0x8a   : > { %666 = vst [vmem:[%s1126_s25 + $0x290] sm:$0xff] %v538_v11  ;;  %v307_v11 = vld [vmem:[%s1091_s5 + $0x368] sm:$0xff]  ;;  %v435_v16 = vmul.f32 %v1102_v4, %v306_v8  ;;  %v562_v21 = vadd.f32 %v1098_v1, %v433_v10 }
  0x8b   : > { %667 = vst [vmem:[%s1126_s25 + $0x298] sm:$0xff] %v539_v14  ;;  %v308_v14 = vld [vmem:[%s1091_s5 + $0x370] sm:$0xff]  ;;  %v436_v19 = vmul.f32 %v1102_v4, %v307_v11  ;;  %v563_v24 = vadd.f32 %v1098_v1, %v434_v13 }
  0x8c   : > { %668 = vst [vmem:[%s1126_s25 + $0x2a0] sm:$0xff] %v540_v17  ;;  %v309_v17 = vld [vmem:[%s1091_s5 + $0x378] sm:$0xff]  ;;  %v437_v22 = vmul.f32 %v1102_v4, %v308_v14  ;;  %v564_v27 = vadd.f32 %v1098_v1, %v435_v16 }
  0x8d   : > { %669 = vst [vmem:[%s1126_s25 + $0x2a8] sm:$0xff] %v541_v20  ;;  %v310_v20 = vld [vmem:[%s1091_s5 + $0x380] sm:$0xff]  ;;  %v438_v25 = vmul.f32 %v1102_v4, %v309_v17  ;;  %v565_v30 = vadd.f32 %v1098_v1, %v436_v19 }
  0x8e   : > { %670 = vst [vmem:[%s1126_s25 + $0x2b0] sm:$0xff] %v542_v23  ;;  %v311_v23 = vld [vmem:[%s1091_s5 + $0x388] sm:$0xff]  ;;  %v439_v28 = vmul.f32 %v1102_v4, %v310_v20  ;;  %v566_v33 = vadd.f32 %v1098_v1, %v437_v22 }
  0x8f   : > { %671 = vst [vmem:[%s1126_s25 + $0x2b8] sm:$0xff] %v543_v26  ;;  %v312_v26 = vld [vmem:[%s1091_s5 + $0x390] sm:$0xff]  ;;  %v440_v31 = vmul.f32 %v1102_v4, %v311_v23  ;;  %v567_v36 = vadd.f32 %v1098_v1, %v438_v25 }
  0x90   : > { %672 = vst [vmem:[%s1126_s25 + $0x2c0] sm:$0xff] %v544_v29  ;;  %v313_v29 = vld [vmem:[%s1091_s5 + $0x398] sm:$0xff]  ;;  %v441_v34 = vmul.f32 %v1102_v4, %v312_v26  ;;  %v568_v39 = vadd.f32 %v1098_v1, %v439_v28 }
  0x91   : > { %673 = vst [vmem:[%s1126_s25 + $0x2c8] sm:$0xff] %v545_v32  ;;  %v314_v32 = vld [vmem:[%s1091_s5 + $0x3a0] sm:$0xff]  ;;  %v442_v37 = vmul.f32 %v1102_v4, %v313_v29  ;;  %v569_v42 = vadd.f32 %v1098_v1, %v440_v31 }
  0x92   : > { %674 = vst [vmem:[%s1126_s25 + $0x2d0] sm:$0xff] %v546_v35  ;;  %v315_v35 = vld [vmem:[%s1091_s5 + $0x3a8] sm:$0xff]  ;;  %v443_v40 = vmul.f32 %v1102_v4, %v314_v32  ;;  %v570_v45 = vadd.f32 %v1098_v1, %v441_v34 }
  0x93   : > { %675 = vst [vmem:[%s1126_s25 + $0x2d8] sm:$0xff] %v547_v38  ;;  %v316_v38 = vld [vmem:[%s1091_s5 + $0x3b0] sm:$0xff]  ;;  %v444_v43 = vmul.f32 %v1102_v4, %v315_v35  ;;  %v571_v48 = vadd.f32 %v1098_v1, %v442_v37 }
  0x94   : > { %676 = vst [vmem:[%s1126_s25 + $0x2e0] sm:$0xff] %v548_v41  ;;  %v317_v41 = vld [vmem:[%s1091_s5 + $0x3b8] sm:$0xff]  ;;  %v445_v46 = vmul.f32 %v1102_v4, %v316_v38  ;;  %v572_v51 = vadd.f32 %v1098_v1, %v443_v40 }
  0x95   : > { %677 = vst [vmem:[%s1126_s25 + $0x2e8] sm:$0xff] %v549_v44  ;;  %v318_v44 = vld [vmem:[%s1091_s5 + $0x3c0] sm:$0xff]  ;;  %v446_v49 = vmul.f32 %v1102_v4, %v317_v41  ;;  %v573_v54 = vadd.f32 %v1098_v1, %v444_v43 }
  0x96   : > { %678 = vst [vmem:[%s1126_s25 + $0x2f0] sm:$0xff] %v550_v47  ;;  %v319_v47 = vld [vmem:[%s1091_s5 + $0x3c8] sm:$0xff]  ;;  %v447_v52 = vmul.f32 %v1102_v4, %v318_v44  ;;  %v574_v57 = vadd.f32 %v1098_v1, %v445_v46 }
  0x97   : > { %679 = vst [vmem:[%s1126_s25 + $0x2f8] sm:$0xff] %v551_v50  ;;  %v320_v50 = vld [vmem:[%s1091_s5 + $0x3d0] sm:$0xff]  ;;  %v448_v55 = vmul.f32 %v1102_v4, %v319_v47  ;;  %v575_v60 = vadd.f32 %v1098_v1, %v446_v49 }
  0x98   : > { %680 = vst [vmem:[%s1126_s25 + $0x300] sm:$0xff] %v552_v53  ;;  %v321_v53 = vld [vmem:[%s1091_s5 + $0x3d8] sm:$0xff]  ;;  %v449_v58 = vmul.f32 %v1102_v4, %v320_v50  ;;  %v576_v63 = vadd.f32 %v1098_v1, %v447_v52 }
  0x99   : > { %681 = vst [vmem:[%s1126_s25 + $0x308] sm:$0xff] %v553_v56  ;;  %v322_v56 = vld [vmem:[%s1091_s5 + $0x3e0] sm:$0xff]  ;;  %v450_v61 = vmul.f32 %v1102_v4, %v321_v53  ;;  %v577_v3 = vadd.f32 %v1098_v1, %v448_v55 }
  0x9a   : > { %682 = vst [vmem:[%s1126_s25 + $0x310] sm:$0xff] %v554_v59  ;;  %v323_v59 = vld [vmem:[%s1091_s5 + $0x3e8] sm:$0xff]  ;;  %v451_v0 = vmul.f32 %v1102_v4, %v322_v56 }
  0x9b   : > { %683 = vst [vmem:[%s1126_s25 + $0x318] sm:$0xff] %v555_v62  ;;  %v324_v62 = vld [vmem:[%s1091_s5 + $0x3f0] sm:$0xff]  ;;  %v452_v5 = vmul.f32 %v1102_v4, %v323_v59  ;;  %v579_v8 = vadd.f32 %v1098_v1, %v450_v61 }
  0x9c   : > { %684 = vst [vmem:[%s1126_s25 + $0x320] sm:$0xff] %v556_v2  ;;  %v325_v2 = vld [vmem:[%s1091_s5 + $0x3f8] sm:$0xff]  ;;  %v453_v7 = vmul.f32 %v1102_v4, %v324_v62  ;;  %v580_v10 = vadd.f32 %v1098_v1, %v451_v0 }
  0x9d   : > { %685 = vst [vmem:[%s1126_s25 + $0x328] sm:$0xff] %v557_v6  ;;  %v578_v6 = vadd.f32 %v1098_v1, %v449_v58  ;;  %v581_v11 = vadd.f32 %v1098_v1, %v452_v5 }
  0x9e   : > { %686 = vst [vmem:[%s1126_s25 + $0x330] sm:$0xff] %v558_v9  ;;  %v454_v9 = vmul.f32 %v1102_v4, %v325_v2 }
  0x9f   : > { %687 = vst [vmem:[%s1126_s25 + $0x338] sm:$0xff] %v559_v12  ;;  %v582_v12 = vadd.f32 %v1098_v1, %v453_v7 }
  0xa0   : > { %688 = vst [vmem:[%s1126_s25 + $0x340] sm:$0xff] %v560_v15  ;;  %v583_v13 = vadd.f32 %v1098_v1, %v454_v9 }
  0xa1   : > { %689 = vst [vmem:[%s1126_s25 + $0x348] sm:$0xff] %v561_v18 }
  0xa2   : > { %690 = vst [vmem:[%s1126_s25 + $0x350] sm:$0xff] %v562_v21 }
  0xa3   : > { %691 = vst [vmem:[%s1126_s25 + $0x358] sm:$0xff] %v563_v24 }
  0xa4   : > { %692 = vst [vmem:[%s1126_s25 + $0x360] sm:$0xff] %v564_v27 }
  0xa5   : > { %693 = vst [vmem:[%s1126_s25 + $0x368] sm:$0xff] %v565_v30 }
  0xa6   : > { %694 = vst [vmem:[%s1126_s25 + $0x370] sm:$0xff] %v566_v33 }
  0xa7   : > { %695 = vst [vmem:[%s1126_s25 + $0x378] sm:$0xff] %v567_v36 }
  0xa8   : > { %696 = vst [vmem:[%s1126_s25 + $0x380] sm:$0xff] %v568_v39 }
  0xa9   : > { %697 = vst [vmem:[%s1126_s25 + $0x388] sm:$0xff] %v569_v42 }
  0xaa   : > { %698 = vst [vmem:[%s1126_s25 + $0x390] sm:$0xff] %v570_v45 }
  0xab   : > { %699 = vst [vmem:[%s1126_s25 + $0x398] sm:$0xff] %v571_v48 }
  0xac   : > { %700 = vst [vmem:[%s1126_s25 + $0x3a0] sm:$0xff] %v572_v51 }
  0xad   : > { %701 = vst [vmem:[%s1126_s25 + $0x3a8] sm:$0xff] %v573_v54 }
  0xae   : > { %702 = vst [vmem:[%s1126_s25 + $0x3b0] sm:$0xff] %v574_v57 }
  0xaf   : > { %703 = vst [vmem:[%s1126_s25 + $0x3b8] sm:$0xff] %v575_v60 }
  0xb0   : > { %704 = vst [vmem:[%s1126_s25 + $0x3c0] sm:$0xff] %v576_v63 }
  0xb1   : > { %705 = vst [vmem:[%s1126_s25 + $0x3c8] sm:$0xff] %v577_v3 }
  0xb2   : > { %706 = vst [vmem:[%s1126_s25 + $0x3d0] sm:$0xff] %v578_v6 }
  0xb3   : > { %707 = vst [vmem:[%s1126_s25 + $0x3d8] sm:$0xff] %v579_v8 }
  0xb4   : > { %708 = vst [vmem:[%s1126_s25 + $0x3e0] sm:$0xff] %v580_v10 }
  0xb5   : > { %709 = vst [vmem:[%s1126_s25 + $0x3e8] sm:$0xff] %v581_v11 }
  0xb6   : > { %710 = vst [vmem:[%s1126_s25 + $0x3f0] sm:$0xff] %v582_v12 }
  0xb7   : > { %711 = vst [vmem:[%s1126_s25 + $0x3f8] sm:$0xff] %v583_v13 }
  0xb8   : > { %929 = shalt.err (!%p926_p4)
}
  0xb9   : > { %s972_s29 = smov 512   ;;  %s973_s30 = smov 32  }
  0xba   : > { %824 = dma.vmem_to_hbm [thread:$0]  (%p1049_p10), %s727_s11, 16384, %s729_s12, %s713_s13, %s972_s29, %s972_s29, %s973_s30  }
  0xbb PF: > { %p835_p5 = scmp.ge.s32.totalorder %s968_s19, 2  ;;  %s743_s4 = sand.u32 1, %s956_s16  }
  0xbc   : > { %s744_s5 = scalar_lea.sflag [#allocation6], %s743_s4 }
  0xbd   : > { %p831_p7 = pnand %p835_p5, %p1053_p11 }
  0xbf   : > { %p832_p8 = pneg %p831_p7 }
  0xc1   : > { %951 = dma.done.wait (%p832_p8), %s744_s5, 16384  }
  0xc2   : > { %953 = vsyncadd (%p832_p8), %s744_s5, 4294950912  ;;  %p18_p9 = scmp.ge.s32.totalorder %s1025_s20, 10   ;;  %s1659_s16 = smov %s960_s17 }
  0xc3   : > { %s1660_s17 = smov %s964_s18  ;;  %s1661_s18 = smov %s1037_s23 }
  0xc4   : > { %s1662_s19 = smov %s1025_s20  ;;  %20 = sbr.rel (!%p18_p9) target bundleno = 8 (0x8), region = 77 }
  0xc9   :  { %750 = vsyncpa [#allocation5], 1 }
  0xca   :  { %752 = vsyncpa [#allocation5 + $0x1], 1 }
  0xcb   :  { %753 = vsyncpa [#allocation6], 1 }
  0xcc   :  { %755 = vsyncpa [#allocation6 + $0x1], 1 }

</bundles_post_ra>
